<compile_context>
chip_gen: v5e
topology: v5e:2x2
jax: 0.10.0
libtpu: 0.0.40
codegen_flags: <defaults>
</compile_context>

<pallas_src>
import functools
import math

import jax
import jax.numpy as jnp
from jax import lax
from jax.experimental import pallas as pl
from jax.experimental.pallas import tpu as pltpu


_NEG_BIG = -1e30  # "log(0)" stand-in for padded rows/cols (avoids -inf -> NaN)


def _lse(m, axis):
    mx = jnp.max(m, axis=axis, keepdims=True)
    return mx + jnp.log(jnp.sum(jnp.exp(m - mx), axis=axis, keepdims=True))


def _sinkhorn_kernel(x_ref, y_ref, cost_ref, pi_ref, c_ref, *,
                     eps, max_iter, thresh, p1, p2, err_every):
    x_in = x_ref[...]                                    # (Nb, P1p, D) native dtype
    y_in = y_ref[...]                                    # (Nb, P2p, D)
    Nb, P1p, _ = x_in.shape
    P2p = y_in.shape[1]

    # ---- cost matrix on the MXU (p=2): C = ||x||^2 + ||y||^2 - 2 x.y^T ------
    xy = jnp.einsum("bid,bjd->bij", x_in, y_in,
                    preferred_element_type=jnp.float32)  # (Nb, P1p, P2p)
    xf = x_in.astype(jnp.float32)
    yf = y_in.astype(jnp.float32)
    x2 = jnp.sum(xf * xf, axis=-1, keepdims=True)        # (Nb, P1p, 1)
    y2 = jnp.sum(yf * yf, axis=-1, keepdims=True)        # (Nb, P2p, 1)
    C = jnp.maximum(x2 - 2.0 * xy + jnp.transpose(y2, (0, 2, 1)), 0.0)
    c_ref[...] = C

    # Only Cs = C/eps stays live through the loop; C's live range ends here.
    Cs = C * jnp.float32(1.0 / eps)

    # ---- padding masks: pad rows/cols get ~log(0) marginals -----------------
    row_real = lax.broadcasted_iota(jnp.int32, (1, P1p, 1), 1) < p1
    col_real = lax.broadcasted_iota(jnp.int32, (1, 1, P2p), 2) < p2
    log_mu = jnp.where(row_real, jnp.float32(math.log(1.0 / p1 + 1e-8)),
                       jnp.float32(_NEG_BIG))            # (1, P1p, 1)
    log_nu = jnp.where(col_real, jnp.float32(math.log(1.0 / p2 + 1e-8)),
                       jnp.float32(_NEG_BIG))            # (1, 1, P2p)

    # eps-scaled dual domain: a = u/eps, b = v/eps, M = a + b - Cs.  Since a is
    # constant along axis=2 and b along axis=1, the '+a'/'+b' terms cancel:
    #   a_new = log_mu - lse_j(b - Cs),   b_new = log_nu - lse_i(a_new - Cs)
    def cond(carry):
        it, _, _, err = carry
        return jnp.logical_and(it < max_iter, err >= thresh)

    def body(carry):
        it, a, b, _ = carry

        def inner(k, state):
            a_cur, b_cur, delta_last = state
            active = (it + k) < max_iter                 # never exceed max_iter
            a_next = log_mu - _lse(b_cur - Cs, axis=2)   # (Nb, P1p, 1)
            b_next = log_nu - _lse(a_next - Cs, axis=1)  # (Nb, 1, P2p)
            delta = jnp.sum(
                jnp.where(row_real, jnp.abs(a_next - a_cur), 0.0),
                axis=(1, 2), keepdims=True)              # (Nb, 1, 1), real rows only
            a_out = jnp.where(active, a_next, a_cur)
            b_out = jnp.where(active, b_next, b_cur)
            d_out = jnp.where(active, delta, delta_last)
            return (a_out, b_out, d_out)

        # err (a vector->scalar sync feeding the while cond) is computed only
        # once per `err_every` u/v updates.
        a_f, b_f, delta_f = lax.fori_loop(
            0, err_every, inner,
            (a, b, jnp.zeros((Nb, 1, 1), jnp.float32)), unroll=True)
        err = jnp.float32(eps) * jnp.mean(delta_f)
        return (it + err_every, a_f, b_f, err)

    a0 = jnp.zeros((Nb, P1p, 1), jnp.float32)
    b0 = jnp.broadcast_to(jnp.where(col_real, 0.0, jnp.float32(_NEG_BIG)),
                          (Nb, 1, P2p))
    _, a, b, _ = lax.while_loop(cond, body,
                                (jnp.int32(0), a0, b0, jnp.float32(jnp.inf)))

    pi = jnp.exp(a + b - Cs)                             # pad rows/cols -> exactly 0
    pi_ref[...] = pi

    # cost[b] = sum_ij pi * C == eps * sum_ij pi * Cs; lane-dense (128-wide) store.
    cost = jnp.float32(eps) * jnp.sum(pi * Cs, axis=(1, 2), keepdims=True)
    cost_ref[...] = jnp.broadcast_to(cost, (Nb, 1, 128))


def _round_up(v, m):
    return ((v + m - 1) // m) * m


def _vmem_capacity_bytes():
    try:
        return int(pltpu.get_tpu_info().vmem_capacity_bytes)
    except Exception:
        return 128 * 2**20   # v5e/v6e default if the query is unavailable


def _tile_footprint_bytes(nb, p1p, p2p, d):
    # f32 worst-case accounting:
    #  - double-buffered x/y input tiles,
    #  - double-buffered pi/C output tiles (+ tiny cost tile),
    #  - resident Cs plus ~3 full-matrix loop temporaries (b-Cs, exp, pi).
    in_b = 2 * 4 * nb * (p1p + p2p) * d
    out_b = 2 * 4 * nb * (2 * p1p * p2p + 128)
    live_b = 4 * nb * 4 * p1p * p2p
    return in_b + out_b + live_b


def _choose_batch_tile(N, p1p, p2p, d, budget_bytes):
    # Largest divisor of N that fits the budget, capped at N//2 so the grid has
    # >= 2 steps (both v7x TensorCores busy, pipelining enabled elsewhere).
    cap = max(1, N // 2)
    for nb in range(cap, 0, -1):
        if N % nb == 0 and _tile_footprint_bytes(nb, p1p, p2p, d) <= budget_bytes:
            return nb
    return 1


def make_sinkhorn(eps, max_iter, reduction="none", thresh=0.1, err_every=5):
    """Returns (x, y) -> (cost, pi, C) matching SinkhornDistance.forward (p=2)."""

    def forward(x, y):
        assert x.ndim == 3 and y.ndim == 3, "expecting (N, P, D) inputs"
        N, P1, D = x.shape
        N2, P2, D2 = y.shape
        assert N2 == N and D2 == D, "batch / feature dims must match"

        # Lane-dense padding: P1 -> multiple of 8 (sublanes), P2 -> multiple of
        # 128 (lanes).  Pad rows/cols are masked inside the kernel (zero mass)
        # and the outputs are sliced back below.
        P1p = _round_up(P1, 8)
        P2p = _round_up(P2, 128)
        x_p = jnp.pad(x, ((0, 0), (0, P1p - P1), (0, 0)))
        y_p = jnp.pad(y, ((0, 0), (0, P2p - P2), (0, 0)))

        vmem_cap = _vmem_capacity_bytes()
        budget = int(0.55 * vmem_cap)            # ~35 MiB on v7x, ~70 MiB on v5e/v6e
        Nb = _choose_batch_tile(N, P1p, P2p, D, budget)
        grid = (N // Nb,)

        footprint = _tile_footprint_bytes(Nb, P1p, P2p, D)
        vmem_limit = int(min(int(0.75 * vmem_cap),      # ~48 MiB v7x, ~96 MiB v5e/v6e
                             max(32 * 2**20, 2 * footprint)))

        kernel = functools.partial(
            _sinkhorn_kernel, eps=float(eps), max_iter=int(max_iter),
            thresh=float(thresh), p1=int(P1), p2=int(P2),
            err_every=int(err_every))

        # TODO(synk): on v7x, consider pipeline_mode=pl.Buffered(1) for the big
        # pi/C output blocks and a bf16 Cs in the hot loop (v6e/v7x only) once
        # the convergence tolerance is validated.
        cost3d, pi_p, C_p = pl.pallas_call(
            kernel,
            grid=grid,
            in_specs=[
                pl.BlockSpec((Nb, P1p, D), lambda b: (b, 0, 0)),
                pl.BlockSpec((Nb, P2p, D), lambda b: (b, 0, 0)),
            ],
            out_specs=(
                pl.BlockSpec((Nb, 1, 128), lambda b: (b, 0, 0)),
                pl.BlockSpec((Nb, P1p, P2p), lambda b: (b, 0, 0)),
                pl.BlockSpec((Nb, P1p, P2p), lambda b: (b, 0, 0)),
            ),
            out_shape=(
                jax.ShapeDtypeStruct((N, 1, 128), jnp.float32),
                jax.ShapeDtypeStruct((N, P1p, P2p), jnp.float32),
                jax.ShapeDtypeStruct((N, P1p, P2p), jnp.float32),
            ),
            compiler_params=pltpu.CompilerParams(
                dimension_semantics=("parallel",),
                vmem_limit_bytes=vmem_limit,
            ),
        )(x_p, y_p)   # native dtype in; kernel handles f32 promotion

        cost = cost3d[:, 0, 0]                    # (N,)
        pi = pi_p[:, :P1, :P2]
        C = C_p[:, :P1, :P2]
        if reduction == "mean":
            cost = jnp.mean(cost)
        elif reduction == "sum":
            cost = jnp.sum(cost)
        return cost, pi, C

    return forward


if __name__ == "__main__":
    # Small deterministic example consistent with the module's (N, P, D) inputs.
    key = jax.random.PRNGKey(0)
    kx, ky = jax.random.split(key)
    N, P1, P2, D = 2, 8, 8, 32
    x = jax.random.normal(kx, (N, P1, D), dtype=jnp.float32)
    y = jax.random.normal(ky, (N, P2, D), dtype=jnp.float32)

    sinkhorn = make_sinkhorn(eps=0.1, max_iter=100, reduction="none")
    cost, pi, C = jax.jit(sinkhorn)(x, y)
    jax.block_until_ready((cost, pi, C))

    assert cost.shape == (N,)
    assert pi.shape == (N, P1, P2)
    assert C.shape == (N, P1, P2)
    assert bool(jnp.all(jnp.isfinite(cost)))
    assert bool(jnp.all(pi >= 0.0))

    # Cost matrix matches the |x_i - y_j|^2 broadcast definition.
    C_ref = jnp.sum((x[:, :, None, :] - y[:, None, :, :]) ** 2, axis=-1)
    assert bool(jnp.max(jnp.abs(C - C_ref)) < 5e-3)
    # Transport plan total mass ~ 1 (column marginals are enforced by the last
    # v-update of the Sinkhorn loop; padded columns carry zero mass).
    assert bool(jnp.all(jnp.abs(jnp.sum(pi, axis=(1, 2)) - 1.0) < 1e-2))

    print("KERNEL_OK")
</pallas_src>

<mosaic_0001>
module attributes {stable_mosaic.version = 11 : i64} {
  func.func @_sinkhorn_kernel(%arg0: i32, %arg1: memref<1x8x32xf32, #tpu.memory_space<vmem>>, %arg2: memref<1x128x32xf32, #tpu.memory_space<vmem>>, %arg3: memref<1x1x128xf32, #tpu.memory_space<vmem>>, %arg4: memref<1x8x128xf32, #tpu.memory_space<vmem>>, %arg5: memref<1x8x128xf32, #tpu.memory_space<vmem>>) attributes {dimension_semantics = [#tpu.dimension_semantics<parallel>], iteration_bounds = array<i64: 2>, scalar_prefetch = 0 : i64, scratch_operands = 0 : i64, tpu.core_type = #tpu.core_type<tc>, window_params = [{transform_indices = @transform_0, window_bounds = array<i64: 1, 8, 32>}, {transform_indices = @transform_1, window_bounds = array<i64: 1, 128, 32>}, {transform_indices = @transform_2, window_bounds = array<i64: 1, 1, 128>}, {transform_indices = @transform_3, window_bounds = array<i64: 1, 8, 128>}, {transform_indices = @transform_4, window_bounds = array<i64: 1, 8, 128>}]} {
    %c0 = arith.constant 0 : index
    %c0_0 = arith.constant 0 : index
    %c0_1 = arith.constant 0 : index
    %0 = vector.load %arg1[%c0, %c0_0, %c0_1] : memref<1x8x32xf32, #tpu.memory_space<vmem>>, vector<1x8x32xf32>
    %c0_2 = arith.constant 0 : index
    %c0_3 = arith.constant 0 : index
    %c0_4 = arith.constant 0 : index
    %1 = vector.load %arg2[%c0_2, %c0_3, %c0_4] : memref<1x128x32xf32, #tpu.memory_space<vmem>>, vector<1x128x32xf32>
    "tpu.trace_start"() <{level = 10 : i32, message = "bid,bjd->bij"}> : () -> ()
    %cst = arith.constant dense<0.000000e+00> : vector<1x8x128xf32>
    %2 = tpu.matmul %0, %1, %cst {dimension_numbers = #tpu.dot_dimension_numbers<[2], [2], [1], [1], [0, 0, 0, 1, 1, 1], [0], [0]>} : vector<1x8x32xf32>, vector<1x128x32xf32>, vector<1x8x128xf32> -> vector<1x8x128xf32>
    "tpu.trace_stop"() : () -> ()
    %3 = arith.mulf %0, %0 : vector<1x8x32xf32>
    %cst_5 = arith.constant dense<0.000000e+00> : vector<1x8xf32>
    %4 = vector.multi_reduction <add>, %3, %cst_5 [2] : vector<1x8x32xf32> to vector<1x8xf32>
    %5 = vector.shape_cast %4 : vector<1x8xf32> to vector<1x8x1xf32>
    %6 = arith.mulf %1, %1 : vector<1x128x32xf32>
    %cst_6 = arith.constant dense<0.000000e+00> : vector<1x128xf32>
    %7 = vector.multi_reduction <add>, %6, %cst_6 [2] : vector<1x128x32xf32> to vector<1x128xf32>
    %8 = vector.shape_cast %7 : vector<1x128xf32> to vector<1x128x1xf32>
    %cst_7 = arith.constant 2.000000e+00 : f32
    %9 = vector.broadcast %cst_7 : f32 to vector<1x8x128xf32>
    %10 = arith.mulf %9, %2 : vector<1x8x128xf32>
    %11 = vector.broadcast %5 : vector<1x8x1xf32> to vector<1x8x128xf32>
    %12 = arith.subf %11, %10 : vector<1x8x128xf32>
    %13 = tpu.transpose %8, [0, 2, 1] : vector<1x128x1xf32> -> vector<1x1x128xf32>
    %14 = vector.broadcast %13 : vector<1x1x128xf32> to vector<1x8x128xf32>
    %15 = arith.addf %12, %14 : vector<1x8x128xf32>
    %cst_8 = arith.constant 0.000000e+00 : f32
    %16 = vector.broadcast %cst_8 : f32 to vector<1x8x128xf32>
    %17 = arith.maximumf %15, %16 : vector<1x8x128xf32>
    %c0_9 = arith.constant 0 : index
    %c0_10 = arith.constant 0 : index
    %c0_11 = arith.constant 0 : index
    %18 = vector.load %arg5[%c0_9, %c0_10, %c0_11] : memref<1x8x128xf32, #tpu.memory_space<vmem>>, vector<1x8x128xf32>
    tpu.vector_store %arg5[%c0_9, %c0_10, %c0_11], %17 {strides = array<i32>} : memref<1x8x128xf32, #tpu.memory_space<vmem>>, vector<1x8x128xf32>,
    %cst_12 = arith.constant 1.000000e+01 : f32
    %19 = vector.broadcast %cst_12 : f32 to vector<1x8x128xf32>
    %20 = arith.mulf %17, %19 : vector<1x8x128xf32>
    %21 = tpu.iota {dimensions = array<i32: 1>} : vector<1x8x1xi32>
    %c8_i32 = arith.constant 8 : i32
    %22 = vector.broadcast %c8_i32 : i32 to vector<1x8x1xi32>
    %23 = arith.cmpi slt, %21, %22 : vector<1x8x1xi32>
    %24 = tpu.iota {dimensions = array<i32: 2>} : vector<1x1x128xi32>
    %c8_i32_13 = arith.constant 8 : i32
    %25 = vector.broadcast %c8_i32_13 : i32 to vector<1x1x128xi32>
    %26 = arith.cmpi slt, %24, %25 : vector<1x1x128xi32>
    %cst_14 = arith.constant -2.07944155 : f32
    %cst_15 = arith.constant -1.000000e+30 : f32
    %27 = vector.broadcast %cst_14 : f32 to vector<1x8x1xf32>
    %28 = vector.broadcast %cst_15 : f32 to vector<1x8x1xf32>
    %29 = arith.select %23, %27, %28 : vector<1x8x1xi1>, vector<1x8x1xf32>
    %cst_16 = arith.constant -2.07944155 : f32
    %cst_17 = arith.constant -1.000000e+30 : f32
    %30 = vector.broadcast %cst_16 : f32 to vector<1x1x128xf32>
    %31 = vector.broadcast %cst_17 : f32 to vector<1x1x128xf32>
    %32 = arith.select %26, %30, %31 : vector<1x1x128xi1>, vector<1x1x128xf32>
    %cst_18 = arith.constant 0.000000e+00 : f32
    %33 = vector.broadcast %cst_18 : f32 to vector<1x8x1xf32>
    %cst_19 = arith.constant 0.000000e+00 : f32
    %cst_20 = arith.constant -1.000000e+30 : f32
    %34 = vector.broadcast %cst_19 : f32 to vector<1x1x128xf32>
    %35 = vector.broadcast %cst_20 : f32 to vector<1x1x128xf32>
    %36 = arith.select %26, %34, %35 : vector<1x1x128xi1>, vector<1x1x128xf32>
    %c0_i32 = arith.constant 0 : i32
    %cst_21 = arith.constant 0x7F800000 : f32
    %37:4 = scf.while (%arg6 = %c0_i32, %arg7 = %33, %arg8 = %36, %arg9 = %cst_21) : (i32, vector<1x8x1xf32>, vector<1x1x128xf32>, f32) -> (i32, vector<1x8x1xf32>, vector<1x1x128xf32>, f32) {
      %c100_i32 = arith.constant 100 : i32
      %52 = arith.cmpi slt, %arg6, %c100_i32 : i32
      %cst_30 = arith.constant 1.000000e-01 : f32
      %53 = arith.cmpf oge, %arg9, %cst_30 : f32
      %54 = arith.andi %52, %53 : i1
      scf.condition(%54) %arg6, %arg7, %arg8, %arg9 : i32, vector<1x8x1xf32>, vector<1x1x128xf32>, f32
    } do {
    ^bb0(%arg6: i32, %arg7: vector<1x8x1xf32>, %arg8: vector<1x1x128xf32>, %arg9: f32):
      %cst_30 = arith.constant 0.000000e+00 : f32
      %52 = vector.broadcast %cst_30 : f32 to vector<1x1x1xf32>
      %c0_i32_31 = arith.constant 0 : i32
      %53 = arith.addi %arg6, %c0_i32_31 : i32
      %c100_i32 = arith.constant 100 : i32
      %54 = arith.cmpi slt, %53, %c100_i32 : i32
      %55 = vector.broadcast %arg8 : vector<1x1x128xf32> to vector<1x8x128xf32>
      %56 = arith.subf %55, %20 : vector<1x8x128xf32>
      %cst_32 = arith.constant dense<0xFF800000> : vector<1x8xf32>
      %57 = vector.multi_reduction <maximumf>, %56, %cst_32 [2] : vector<1x8x128xf32> to vector<1x8xf32>
      %58 = vector.shape_cast %57 : vector<1x8xf32> to vector<1x8x1xf32>
      %59 = vector.broadcast %58 : vector<1x8x1xf32> to vector<1x8x128xf32>
      %60 = arith.subf %56, %59 : vector<1x8x128xf32>
      %61 = math.exp %60 : vector<1x8x128xf32>
      %cst_33 = arith.constant dense<0.000000e+00> : vector<1x8xf32>
      %62 = vector.multi_reduction <add>, %61, %cst_33 [2] : vector<1x8x128xf32> to vector<1x8xf32>
      %63 = vector.shape_cast %62 : vector<1x8xf32> to vector<1x8x1xf32>
      %64 = math.log %63 : vector<1x8x1xf32>
      %65 = arith.addf %58, %64 : vector<1x8x1xf32>
      %66 = arith.subf %29, %65 : vector<1x8x1xf32>
      %67 = vector.broadcast %66 : vector<1x8x1xf32> to vector<1x8x128xf32>
      %68 = arith.subf %67, %20 : vector<1x8x128xf32>
      %cst_34 = arith.constant dense<0xFF800000> : vector<1x128xf32>
      %69 = vector.multi_reduction <maximumf>, %68, %cst_34 [1] : vector<1x8x128xf32> to vector<1x128xf32>
      %70 = vector.shape_cast %69 : vector<1x128xf32> to vector<1x1x128xf32>
      %71 = vector.broadcast %70 : vector<1x1x128xf32> to vector<1x8x128xf32>
      %72 = arith.subf %68, %71 : vector<1x8x128xf32>
      %73 = math.exp %72 : vector<1x8x128xf32>
      %cst_35 = arith.constant dense<0.000000e+00> : vector<1x128xf32>
      %74 = vector.multi_reduction <add>, %73, %cst_35 [1] : vector<1x8x128xf32> to vector<1x128xf32>
      %75 = vector.shape_cast %74 : vector<1x128xf32> to vector<1x1x128xf32>
      %76 = math.log %75 : vector<1x1x128xf32>
      %77 = arith.addf %70, %76 : vector<1x1x128xf32>
      %78 = arith.subf %32, %77 : vector<1x1x128xf32>
      %79 = arith.subf %66, %arg7 : vector<1x8x1xf32>
      %80 = math.absf %79 : vector<1x8x1xf32>
      %cst_36 = arith.constant 0.000000e+00 : f32
      %81 = vector.broadcast %cst_36 : f32 to vector<1x8x1xf32>
      %82 = arith.select %23, %80, %81 : vector<1x8x1xi1>, vector<1x8x1xf32>
      %cst_37 = arith.constant dense<0.000000e+00> : vector<1xf32>
      %83 = vector.multi_reduction <add>, %82, %cst_37 [1, 2] : vector<1x8x1xf32> to vector<1xf32>
      %84 = vector.shape_cast %83 : vector<1xf32> to vector<1x1x1xf32>
      %85 = arith.select %54, %66, %arg7 : vector<1x8x1xf32>
      %86 = arith.select %54, %78, %arg8 : vector<1x1x128xf32>
      %87 = arith.select %54, %84, %52 : vector<1x1x1xf32>
      %c1_i32 = arith.constant 1 : i32
      %88 = arith.addi %arg6, %c1_i32 : i32
      %c100_i32_38 = arith.constant 100 : i32
      %89 = arith.cmpi slt, %88, %c100_i32_38 : i32
      %90 = vector.broadcast %86 : vector<1x1x128xf32> to vector<1x8x128xf32>
      %91 = arith.subf %90, %20 : vector<1x8x128xf32>
      %cst_39 = arith.constant dense<0xFF800000> : vector<1x8xf32>
      %92 = vector.multi_reduction <maximumf>, %91, %cst_39 [2] : vector<1x8x128xf32> to vector<1x8xf32>
      %93 = vector.shape_cast %92 : vector<1x8xf32> to vector<1x8x1xf32>
      %94 = vector.broadcast %93 : vector<1x8x1xf32> to vector<1x8x128xf32>
      %95 = arith.subf %91, %94 : vector<1x8x128xf32>
      %96 = math.exp %95 : vector<1x8x128xf32>
      %cst_40 = arith.constant dense<0.000000e+00> : vector<1x8xf32>
      %97 = vector.multi_reduction <add>, %96, %cst_40 [2] : vector<1x8x128xf32> to vector<1x8xf32>
      %98 = vector.shape_cast %97 : vector<1x8xf32> to vector<1x8x1xf32>
      %99 = math.log %98 : vector<1x8x1xf32>
      %100 = arith.addf %93, %99 : vector<1x8x1xf32>
      %101 = arith.subf %29, %100 : vector<1x8x1xf32>
      %102 = vector.broadcast %101 : vector<1x8x1xf32> to vector<1x8x128xf32>
      %103 = arith.subf %102, %20 : vector<1x8x128xf32>
      %cst_41 = arith.constant dense<0xFF800000> : vector<1x128xf32>
      %104 = vector.multi_reduction <maximumf>, %103, %cst_41 [1] : vector<1x8x128xf32> to vector<1x128xf32>
      %105 = vector.shape_cast %104 : vector<1x128xf32> to vector<1x1x128xf32>
      %106 = vector.broadcast %105 : vector<1x1x128xf32> to vector<1x8x128xf32>
      %107 = arith.subf %103, %106 : vector<1x8x128xf32>
      %108 = math.exp %107 : vector<1x8x128xf32>
      %cst_42 = arith.constant dense<0.000000e+00> : vector<1x128xf32>
      %109 = vector.multi_reduction <add>, %108, %cst_42 [1] : vector<1x8x128xf32> to vector<1x128xf32>
      %110 = vector.shape_cast %109 : vector<1x128xf32> to vector<1x1x128xf32>
      %111 = math.log %110 : vector<1x1x128xf32>
      %112 = arith.addf %105, %111 : vector<1x1x128xf32>
      %113 = arith.subf %32, %112 : vector<1x1x128xf32>
      %114 = arith.subf %101, %85 : vector<1x8x1xf32>
      %115 = math.absf %114 : vector<1x8x1xf32>
      %cst_43 = arith.constant 0.000000e+00 : f32
      %116 = vector.broadcast %cst_43 : f32 to vector<1x8x1xf32>
      %117 = arith.select %23, %115, %116 : vector<1x8x1xi1>, vector<1x8x1xf32>
      %cst_44 = arith.constant dense<0.000000e+00> : vector<1xf32>
      %118 = vector.multi_reduction <add>, %117, %cst_44 [1, 2] : vector<1x8x1xf32> to vector<1xf32>
      %119 = vector.shape_cast %118 : vector<1xf32> to vector<1x1x1xf32>
      %120 = arith.select %89, %101, %85 : vector<1x8x1xf32>
      %121 = arith.select %89, %113, %86 : vector<1x1x128xf32>
      %122 = arith.select %89, %119, %87 : vector<1x1x1xf32>
      %c2_i32 = arith.constant 2 : i32
      %123 = arith.addi %arg6, %c2_i32 : i32
      %c100_i32_45 = arith.constant 100 : i32
      %124 = arith.cmpi slt, %123, %c100_i32_45 : i32
      %125 = vector.broadcast %121 : vector<1x1x128xf32> to vector<1x8x128xf32>
      %126 = arith.subf %125, %20 : vector<1x8x128xf32>
      %cst_46 = arith.constant dense<0xFF800000> : vector<1x8xf32>
      %127 = vector.multi_reduction <maximumf>, %126, %cst_46 [2] : vector<1x8x128xf32> to vector<1x8xf32>
      %128 = vector.shape_cast %127 : vector<1x8xf32> to vector<1x8x1xf32>
      %129 = vector.broadcast %128 : vector<1x8x1xf32> to vector<1x8x128xf32>
      %130 = arith.subf %126, %129 : vector<1x8x128xf32>
      %131 = math.exp %130 : vector<1x8x128xf32>
      %cst_47 = arith.constant dense<0.000000e+00> : vector<1x8xf32>
      %132 = vector.multi_reduction <add>, %131, %cst_47 [2] : vector<1x8x128xf32> to vector<1x8xf32>
      %133 = vector.shape_cast %132 : vector<1x8xf32> to vector<1x8x1xf32>
      %134 = math.log %133 : vector<1x8x1xf32>
      %135 = arith.addf %128, %134 : vector<1x8x1xf32>
      %136 = arith.subf %29, %135 : vector<1x8x1xf32>
      %137 = vector.broadcast %136 : vector<1x8x1xf32> to vector<1x8x128xf32>
      %138 = arith.subf %137, %20 : vector<1x8x128xf32>
      %cst_48 = arith.constant dense<0xFF800000> : vector<1x128xf32>
      %139 = vector.multi_reduction <maximumf>, %138, %cst_48 [1] : vector<1x8x128xf32> to vector<1x128xf32>
      %140 = vector.shape_cast %139 : vector<1x128xf32> to vector<1x1x128xf32>
      %141 = vector.broadcast %140 : vector<1x1x128xf32> to vector<1x8x128xf32>
      %142 = arith.subf %138, %141 : vector<1x8x128xf32>
      %143 = math.exp %142 : vector<1x8x128xf32>
      %cst_49 = arith.constant dense<0.000000e+00> : vector<1x128xf32>
      %144 = vector.multi_reduction <add>, %143, %cst_49 [1] : vector<1x8x128xf32> to vector<1x128xf32>
      %145 = vector.shape_cast %144 : vector<1x128xf32> to vector<1x1x128xf32>
      %146 = math.log %145 : vector<1x1x128xf32>
      %147 = arith.addf %140, %146 : vector<1x1x128xf32>
      %148 = arith.subf %32, %147 : vector<1x1x128xf32>
      %149 = arith.subf %136, %120 : vector<1x8x1xf32>
      %150 = math.absf %149 : vector<1x8x1xf32>
      %cst_50 = arith.constant 0.000000e+00 : f32
      %151 = vector.broadcast %cst_50 : f32 to vector<1x8x1xf32>
      %152 = arith.select %23, %150, %151 : vector<1x8x1xi1>, vector<1x8x1xf32>
      %cst_51 = arith.constant dense<0.000000e+00> : vector<1xf32>
      %153 = vector.multi_reduction <add>, %152, %cst_51 [1, 2] : vector<1x8x1xf32> to vector<1xf32>
      %154 = vector.shape_cast %153 : vector<1xf32> to vector<1x1x1xf32>
      %155 = arith.select %124, %136, %120 : vector<1x8x1xf32>
      %156 = arith.select %124, %148, %121 : vector<1x1x128xf32>
      %157 = arith.select %124, %154, %122 : vector<1x1x1xf32>
      %c3_i32 = arith.constant 3 : i32
      %158 = arith.addi %arg6, %c3_i32 : i32
      %c100_i32_52 = arith.constant 100 : i32
      %159 = arith.cmpi slt, %158, %c100_i32_52 : i32
      %160 = vector.broadcast %156 : vector<1x1x128xf32> to vector<1x8x128xf32>
      %161 = arith.subf %160, %20 : vector<1x8x128xf32>
      %cst_53 = arith.constant dense<0xFF800000> : vector<1x8xf32>
      %162 = vector.multi_reduction <maximumf>, %161, %cst_53 [2] : vector<1x8x128xf32> to vector<1x8xf32>
      %163 = vector.shape_cast %162 : vector<1x8xf32> to vector<1x8x1xf32>
      %164 = vector.broadcast %163 : vector<1x8x1xf32> to vector<1x8x128xf32>
      %165 = arith.subf %161, %164 : vector<1x8x128xf32>
      %166 = math.exp %165 : vector<1x8x128xf32>
      %cst_54 = arith.constant dense<0.000000e+00> : vector<1x8xf32>
      %167 = vector.multi_reduction <add>, %166, %cst_54 [2] : vector<1x8x128xf32> to vector<1x8xf32>
      %168 = vector.shape_cast %167 : vector<1x8xf32> to vector<1x8x1xf32>
      %169 = math.log %168 : vector<1x8x1xf32>
      %170 = arith.addf %163, %169 : vector<1x8x1xf32>
      %171 = arith.subf %29, %170 : vector<1x8x1xf32>
      %172 = vector.broadcast %171 : vector<1x8x1xf32> to vector<1x8x128xf32>
      %173 = arith.subf %172, %20 : vector<1x8x128xf32>
      %cst_55 = arith.constant dense<0xFF800000> : vector<1x128xf32>
      %174 = vector.multi_reduction <maximumf>, %173, %cst_55 [1] : vector<1x8x128xf32> to vector<1x128xf32>
      %175 = vector.shape_cast %174 : vector<1x128xf32> to vector<1x1x128xf32>
      %176 = vector.broadcast %175 : vector<1x1x128xf32> to vector<1x8x128xf32>
      %177 = arith.subf %173, %176 : vector<1x8x128xf32>
      %178 = math.exp %177 : vector<1x8x128xf32>
      %cst_56 = arith.constant dense<0.000000e+00> : vector<1x128xf32>
      %179 = vector.multi_reduction <add>, %178, %cst_56 [1] : vector<1x8x128xf32> to vector<1x128xf32>
      %180 = vector.shape_cast %179 : vector<1x128xf32> to vector<1x1x128xf32>
      %181 = math.log %180 : vector<1x1x128xf32>
      %182 = arith.addf %175, %181 : vector<1x1x128xf32>
      %183 = arith.subf %32, %182 : vector<1x1x128xf32>
      %184 = arith.subf %171, %155 : vector<1x8x1xf32>
      %185 = math.absf %184 : vector<1x8x1xf32>
      %cst_57 = arith.constant 0.000000e+00 : f32
      %186 = vector.broadcast %cst_57 : f32 to vector<1x8x1xf32>
      %187 = arith.select %23, %185, %186 : vector<1x8x1xi1>, vector<1x8x1xf32>
      %cst_58 = arith.constant dense<0.000000e+00> : vector<1xf32>
      %188 = vector.multi_reduction <add>, %187, %cst_58 [1, 2] : vector<1x8x1xf32> to vector<1xf32>
      %189 = vector.shape_cast %188 : vector<1xf32> to vector<1x1x1xf32>
      %190 = arith.select %159, %171, %155 : vector<1x8x1xf32>
      %191 = arith.select %159, %183, %156 : vector<1x1x128xf32>
      %192 = arith.select %159, %189, %157 : vector<1x1x1xf32>
      %c4_i32 = arith.constant 4 : i32
      %193 = arith.addi %arg6, %c4_i32 : i32
      %c100_i32_59 = arith.constant 100 : i32
      %194 = arith.cmpi slt, %193, %c100_i32_59 : i32
      %195 = vector.broadcast %191 : vector<1x1x128xf32> to vector<1x8x128xf32>
      %196 = arith.subf %195, %20 : vector<1x8x128xf32>
      %cst_60 = arith.constant dense<0xFF800000> : vector<1x8xf32>
      %197 = vector.multi_reduction <maximumf>, %196, %cst_60 [2] : vector<1x8x128xf32> to vector<1x8xf32>
      %198 = vector.shape_cast %197 : vector<1x8xf32> to vector<1x8x1xf32>
      %199 = vector.broadcast %198 : vector<1x8x1xf32> to vector<1x8x128xf32>
      %200 = arith.subf %196, %199 : vector<1x8x128xf32>
      %201 = math.exp %200 : vector<1x8x128xf32>
      %cst_61 = arith.constant dense<0.000000e+00> : vector<1x8xf32>
      %202 = vector.multi_reduction <add>, %201, %cst_61 [2] : vector<1x8x128xf32> to vector<1x8xf32>
      %203 = vector.shape_cast %202 : vector<1x8xf32> to vector<1x8x1xf32>
      %204 = math.log %203 : vector<1x8x1xf32>
      %205 = arith.addf %198, %204 : vector<1x8x1xf32>
      %206 = arith.subf %29, %205 : vector<1x8x1xf32>
      %207 = vector.broadcast %206 : vector<1x8x1xf32> to vector<1x8x128xf32>
      %208 = arith.subf %207, %20 : vector<1x8x128xf32>
      %cst_62 = arith.constant dense<0xFF800000> : vector<1x128xf32>
      %209 = vector.multi_reduction <maximumf>, %208, %cst_62 [1] : vector<1x8x128xf32> to vector<1x128xf32>
      %210 = vector.shape_cast %209 : vector<1x128xf32> to vector<1x1x128xf32>
      %211 = vector.broadcast %210 : vector<1x1x128xf32> to vector<1x8x128xf32>
      %212 = arith.subf %208, %211 : vector<1x8x128xf32>
      %213 = math.exp %212 : vector<1x8x128xf32>
      %cst_63 = arith.constant dense<0.000000e+00> : vector<1x128xf32>
      %214 = vector.multi_reduction <add>, %213, %cst_63 [1] : vector<1x8x128xf32> to vector<1x128xf32>
      %215 = vector.shape_cast %214 : vector<1x128xf32> to vector<1x1x128xf32>
      %216 = math.log %215 : vector<1x1x128xf32>
      %217 = arith.addf %210, %216 : vector<1x1x128xf32>
      %218 = arith.subf %32, %217 : vector<1x1x128xf32>
      %219 = arith.subf %206, %190 : vector<1x8x1xf32>
      %220 = math.absf %219 : vector<1x8x1xf32>
      %cst_64 = arith.constant 0.000000e+00 : f32
      %221 = vector.broadcast %cst_64 : f32 to vector<1x8x1xf32>
      %222 = arith.select %23, %220, %221 : vector<1x8x1xi1>, vector<1x8x1xf32>
      %cst_65 = arith.constant dense<0.000000e+00> : vector<1xf32>
      %223 = vector.multi_reduction <add>, %222, %cst_65 [1, 2] : vector<1x8x1xf32> to vector<1xf32>
      %224 = vector.shape_cast %223 : vector<1xf32> to vector<1x1x1xf32>
      %225 = arith.select %194, %206, %190 : vector<1x8x1xf32>
      %226 = arith.select %194, %218, %191 : vector<1x1x128xf32>
      %227 = arith.select %194, %224, %192 : vector<1x1x1xf32>
      %c5_i32 = arith.constant 5 : i32
      %228 = vector.shape_cast %227 : vector<1x1x1xf32> to vector<1x1x1x1xf32>
      %cst_66 = arith.constant dense<0.000000e+00> : vector<1xf32>
      %229 = vector.multi_reduction <add>, %228, %cst_66 [1, 2, 3] : vector<1x1x1x1xf32> to vector<1xf32>
      %230 = vector.shape_cast %229 : vector<1xf32> to vector<1x1x1x1xf32>
      %231 = vector.extract %230[0, 0, 0, 0] : f32 from vector<1x1x1x1xf32>
      %cst_67 = arith.constant 1.000000e+00 : f32
      %232 = arith.divf %231, %cst_67 : f32
      %cst_68 = arith.constant 1.000000e-01 : f32
      %233 = arith.mulf %cst_68, %232 : f32
      %c5_i32_69 = arith.constant 5 : i32
      %234 = arith.addi %arg6, %c5_i32_69 : i32
      scf.yield %234, %225, %226, %233 : i32, vector<1x8x1xf32>, vector<1x1x128xf32>, f32
    }
    %38 = vector.broadcast %37#1 : vector<1x8x1xf32> to vector<1x8x128xf32>
    %39 = vector.broadcast %37#2 : vector<1x1x128xf32> to vector<1x8x128xf32>
    %40 = arith.addf %38, %39 : vector<1x8x128xf32>
    %41 = arith.subf %40, %20 : vector<1x8x128xf32>
    %42 = math.exp %41 : vector<1x8x128xf32>
    %c0_22 = arith.constant 0 : index
    %c0_23 = arith.constant 0 : index
    %c0_24 = arith.constant 0 : index
    %43 = vector.load %arg4[%c0_22, %c0_23, %c0_24] : memref<1x8x128xf32, #tpu.memory_space<vmem>>, vector<1x8x128xf32>
    tpu.vector_store %arg4[%c0_22, %c0_23, %c0_24], %42 {strides = array<i32>} : memref<1x8x128xf32, #tpu.memory_space<vmem>>, vector<1x8x128xf32>,
    %44 = arith.mulf %42, %20 : vector<1x8x128xf32>
    %cst_25 = arith.constant dense<0.000000e+00> : vector<1xf32>
    %45 = vector.multi_reduction <add>, %44, %cst_25 [1, 2] : vector<1x8x128xf32> to vector<1xf32>
    %46 = vector.shape_cast %45 : vector<1xf32> to vector<1x1x1xf32>
    %cst_26 = arith.constant 1.000000e-01 : f32
    %47 = vector.broadcast %cst_26 : f32 to vector<1x1x1xf32>
    %48 = arith.mulf %47, %46 : vector<1x1x1xf32>
    %49 = vector.shape_cast %48 : vector<1x1x1xf32> to vector<1x1x1xf32>
    %50 = vector.broadcast %49 : vector<1x1x1xf32> to vector<1x1x128xf32>
    %c0_27 = arith.constant 0 : index
    %c0_28 = arith.constant 0 : index
    %c0_29 = arith.constant 0 : index
    %51 = vector.load %arg3[%c0_27, %c0_28, %c0_29] : memref<1x1x128xf32, #tpu.memory_space<vmem>>, vector<1x1x128xf32>
    tpu.vector_store %arg3[%c0_27, %c0_28, %c0_29], %50 {strides = array<i32>} : memref<1x1x128xf32, #tpu.memory_space<vmem>>, vector<1x1x128xf32>,
    return
  }
  func.func @transform_0(%arg0: i32) -> (i32, i32, i32) {
    %c0_i32 = arith.constant 0 : i32
    %c0_i32_0 = arith.constant 0 : i32
    %c0_i32_1 = arith.constant 0 : i32
    return %arg0, %c0_i32, %c0_i32_0 : i32, i32, i32
  }
  func.func @transform_1(%arg0: i32) -> (i32, i32, i32) {
    %c0_i32 = arith.constant 0 : i32
    %c0_i32_0 = arith.constant 0 : i32
    %c0_i32_1 = arith.constant 0 : i32
    return %arg0, %c0_i32, %c0_i32_0 : i32, i32, i32
  }
  func.func @transform_2(%arg0: i32) -> (i32, i32, i32) {
    %c0_i32 = arith.constant 0 : i32
    %c0_i32_0 = arith.constant 0 : i32
    %c0_i32_1 = arith.constant 0 : i32
    return %arg0, %c0_i32, %c0_i32_0 : i32, i32, i32
  }
  func.func @transform_3(%arg0: i32) -> (i32, i32, i32) {
    %c0_i32 = arith.constant 0 : i32
    %c0_i32_0 = arith.constant 0 : i32
    %c0_i32_1 = arith.constant 0 : i32
    return %arg0, %c0_i32, %c0_i32_0 : i32, i32, i32
  }
  func.func @transform_4(%arg0: i32) -> (i32, i32, i32) {
    %c0_i32 = arith.constant 0 : i32
    %c0_i32_0 = arith.constant 0 : i32
    %c0_i32_1 = arith.constant 0 : i32
    return %arg0, %c0_i32, %c0_i32_0 : i32, i32, i32
  }
}

</mosaic_0001>

<bundles_post_ra>
// kernel: forward.1
= control target key start
LH: loop header
LB: loop body
LE: loop exit
PB: predicated region body
PF: predicated region fallthrough
CT: control target
= control target key end

     0   :  { %10 = vsyncpa [#allocation3], 0  ;;  %s1552_s0 = inlined_call_operand.vmem [shape: f32[2,8,32], index: 0, kind: input, shape index: {}]   ;;  %s1553_s1 = inlined_call_operand.vmem [shape: f32[2,128,32], index: 1, kind: input, shape index: {}]   ;;  %s1554_s2 = inlined_call_operand.vmem [shape: f32[2,1,128], index: 2, kind: output, shape index: {0}]   ;;  %s1555_s3 = inlined_call_operand.hbm [shape: f32[2,8,128], index: 3, kind: output, shape index: {1}]   ;;  %s1556_s4 = inlined_call_operand.hbm [shape: f32[2,8,128], index: 4, kind: output, shape index: {2}]  }
   0x1   :  { %12 = vsyncpa [#allocation3 + $0x1], 0 }
   0x2   :  { %13 = vsyncpa [#allocation5], 0 }
   0x3   :  { %15 = vsyncpa [#allocation5 + $0x1], 0  ;;  %s1198_s15 = smov 0   ;;  %s1200_s16 = smov 0  }
   0x4   :  { %s1202_s17 = smov 0   ;;  %s1204_s18 = smov 0  }
   0x5 LB: > { %s1219_s19 = sadd.s32 4294967295, %s1158_s18   ;;  %s906_s20 = sadd.s32 4294967294, %s1158_s18   ;;  %s1158_s18 = sphi %s1204_s18, %s1569_s18   ;;  %s1154_s17 = sphi %s1202_s17, %s1568_s17   ;;  %s1150_s16 = sphi %s1200_s16, %s1567_s16   ;;  %s1146_s15 = sphi %s1198_s15, %s1566_s15  }
   0x6   : > { %s1223_s21 = sadd.s32 1, %s1158_s18   ;;  %s106_s22 = sadd.s32 1, %s1154_s17 }
   0x7   : > { %s103_s23 = ssub.s32 %s1158_s18, %s1223_s21  ;;  %p116_p0 = scmp.ne.s32.totalorder %s1154_s17, %s1150_s16 }
   0x8   : > { %p104_p1 = scmp.eq.s32.totalorder %s103_s23, 0  ;;  %p117_p2 = scmp.eq.s32.totalorder %s1219_s19, 1 }
   0x9   : > { %p122_p3 = scmp.ne.s32.totalorder %s1150_s16, %s1146_s15  ;;  %p123_p4 = scmp.eq.s32.totalorder %s906_s20, 1 }
   0xa   : > { %s1234_s24 = scalar_select %p104_p1, %s1154_s17, %s106_s22  }
   0xb   : > { %p1236_p5 = por %p117_p2, %p116_p0  ;;  %p1240_p6 = por %p123_p4, %p122_p3 }
   0xc   : > { %p909_p7 = scmp.ge.s32.totalorder %s1158_s18, 1  ;;  %p182_p8 = scmp.lt.s32.totalorder %s1158_s18, 3 }
   0xe   : > { %p183_p9 = pnand %p909_p7, %p182_p8 }
   0xf   : > { %p220_p10 = scmp.lt.s32.totalorder (!%p183_p9), %s1219_s19, 1  ;;  %s1350_s13 = sand.u32 (!%p183_p9), 1, %s1150_s16  }
  0x10   : > { %186 = sbr.rel (%p183_p9) target bundleno = 2136 (0x858), region = 28  ;;  %s910_s14 = sshll.u32 (!%p183_p9), %s1350_s13, 3 }
  0x11   : > { %s1357_s20 = scalar_lea.vmem (!%p183_p9), [#allocation4], %s910_s14  ;;  %s1364_s22 = scalar_lea.vmem (!%p183_p9), [#allocation2], %s910_s14 }
  0x12   : > { %s1370_s23 = smov (!%p183_p9), 0  }
  0x15   : > { %s1248_s27 = scalar_select %p220_p10, %s1219_s19, 1  ;;  %vm249_vm0 = vcmask 261120  }
  0x17   : > { %s938_s28 = sshll.u32 %s1248_s27, 7  ;;  %s912_s9 = sshll.u32 %s1248_s27, 3 }
  0x18   : > { %s1258_s8 = scalar_lea.vmem %s1553_s1, %s938_s28  ;;  %s223_s12 = scalar_lea.vmem %s1552_s0, %s912_s9 }
  0x19   : > { %v1262_v0 = vld [vmem:[%s1258_s8 + $0x78] sm:$0xff]  ;;  %v1265_v1 = vld [vmem:[%s1258_s8] sm:$0xff]  ;;  %v1272_v3 = vld [vmem:[%s1258_s8 + $0x8] sm:$0xff] }
  0x1a   : > { %915 = vmatpush.xpose.msk.msra.mxu0 %vm249_vm0, %v1262_v0  ;;  %v325_v2 = vmul.f32 %v1265_v1, %v1265_v1  ;;  %v1278_v4 = vld [vmem:[%s1258_s8 + $0x70] sm:$0xff]  ;;  %v326_v5 = vmul.f32 %v1272_v3, %v1272_v3  ;;  %v1287_v8 = vld [vmem:[%s1258_s8 + $0x18] sm:$0xff]  ;;  %v1292_v11 = vld [vmem:[%s223_s12] sm:$0xff]  ;;  %v340_v49 = vmul.f32 %v1262_v0, %v1262_v0 }
  0x1b   : > { %v1284_v7 = vld [vmem:[%s1258_s8 + $0x10] sm:$0xff]  ;;  %v328_v10 = vmul.f32 %v1287_v8, %v1287_v8  ;;  %v237_v12 = vld [vmem:[%s1258_s8 + $0x20] sm:$0xff]  ;;  %v321_v13 = vmul.f32 %v1292_v11, %v1292_v11  ;;  %v246_v14 = vld [vmem:[%s1258_s8 + $0x68] sm:$0xff]  ;;  %v339_v47 = vmul.f32 %v1278_v4, %v1278_v4 }
  0x1c   : > { %v341_v6 = vsel %vm249_vm0, %v325_v2, 0.0  ;;  %v344_v9 = vsel %vm249_vm0, %v326_v5, 0.0  ;;  %v327_v15 = vmul.f32 %v1284_v7, %v1284_v7  ;;  %v329_v17 = vmul.f32 %v237_v12, %v237_v12  ;;  %v245_v19 = vld [vmem:[%s1258_s8 + $0x60] sm:$0xff]  ;;  %v238_v21 = vld [vmem:[%s1258_s8 + $0x28] sm:$0xff]  ;;  %v244_v24 = vld [vmem:[%s1258_s8 + $0x58] sm:$0xff] }
  0x1d   : > { %342 = vadd.xlane.f32.xlu0 %v341_v6  ;;  %345 = vadd.xlane.f32.xlu1 %v344_v9  ;;  %v350_v16 = vsel %vm249_vm0, %v328_v10, 0.0  ;;  %v322_v18 = vsel %vm249_vm0, %v321_v13, 0.0  ;;  %v330_v23 = vmul.f32 %v238_v21, %v238_v21  ;;  %v239_v25 = vld [vmem:[%s1258_s8 + $0x30] sm:$0xff]  ;;  %v242_v30 = vld [vmem:[%s1258_s8 + $0x48] sm:$0xff]  ;;  %v240_v31 = vld [vmem:[%s1258_s8 + $0x38] sm:$0xff]  ;;  %v336_v41 = vmul.f32 %v244_v24, %v244_v24 }
  0x1e   : > { %916 = vmatpush.xpose.msk.msra.mxu0 %vm249_vm0, %v1278_v4  ;;  %351 = vadd.xlane.f32.xlu2 %v350_v16  ;;  %v347_v20 = vsel %vm249_vm0, %v327_v15, 0.0  ;;  %v353_v22 = vsel %vm249_vm0, %v329_v17, 0.0  ;;  %v331_v27 = vmul.f32 %v239_v25, %v239_v25  ;;  %v243_v28 = vld [vmem:[%s1258_s8 + $0x50] sm:$0xff]  ;;  %v332_v32 = vmul.f32 %v240_v31, %v240_v31  ;;  %v241_v33 = vld [vmem:[%s1258_s8 + $0x40] sm:$0xff] }
  0x1f   : > { %v356_v26 = vsel %vm249_vm0, %v330_v23, 0.0  ;;  %v333_v35 = vmul.f32 %v241_v33, %v241_v33  ;;  %v335_v36 = vmul.f32 %v243_v28, %v243_v28  ;;  %v334_v37 = vmul.f32 %v242_v30, %v242_v30 }
  0x20   : > { %v359_v29 = vsel %vm249_vm0, %v331_v27, 0.0  ;;  %v362_v34 = vsel %vm249_vm0, %v332_v32, 0.0  ;;  %v337_v42 = vmul.f32 %v245_v19, %v245_v19  ;;  %v338_v43 = vmul.f32 %v246_v14, %v246_v14 }
  0x21   : > { %v365_v38 = vsel %vm249_vm0, %v333_v35, 0.0  ;;  %v371_v39 = vsel %vm249_vm0, %v335_v36, 0.0  ;;  %v368_v40 = vsel %vm249_vm0, %v334_v37, 0.0  ;;  %v374_v44 = vsel %vm249_vm0, %v336_v41, 0.0 }
  0x22   : > { %917 = vmatpush.xpose.msk.msra.mxu0 %vm249_vm0, %v246_v14  ;;  %v377_v45 = vsel %vm249_vm0, %v337_v42, 0.0  ;;  %v380_v46 = vsel %vm249_vm0, %v338_v43, 0.0  ;;  %v383_v48 = vsel %vm249_vm0, %v339_v47, 0.0  ;;  %v386_v50 = vsel %vm249_vm0, %v340_v49, 0.0 }
  0x23   : > { %v431_v4 = vlaneseq  ;;  %v1172_v6 = vmov -1e+30   ;;  %v1368_v17 = vmov 0.0  }
  0x25   : > { %323 = vadd.xlane.f32.xlu0 %v322_v18  ;;  %348 = vadd.xlane.f32.xlu1 %v347_v20  ;;  %v432_v5 = vand.u32 127, %v431_v4 }
  0x26   : > { %918 = vmatpush.xpose.msk.msra.mxu0 %vm249_vm0, %v245_v19  ;;  %354 = vadd.xlane.f32.xlu2 %v353_v22 }
  0x27   : > { %vm433_vm1 = vcmp.lt.s32.totalorder %v432_v5, 8 }
  0x2a   : > { %919 = vmatpush.xpose.msk.msra.mxu0 %vm249_vm0, %v244_v24 }
  0x2d   : > { %357 = vadd.xlane.f32.xlu0 %v356_v26  ;;  %360 = vadd.xlane.f32.xlu1 %v359_v29 }
  0x2e   : > { %920 = vmatpush.xpose.msk.msra.mxu0 %vm249_vm0, %v243_v28  ;;  %363 = vadd.xlane.f32.xlu2 %v362_v34 }
  0x32   : > { %921 = vmatpush.xpose.msk.msra.mxu0 %vm249_vm0, %v242_v30 }
  0x35   : > { %366 = vadd.xlane.f32.xlu0 %v365_v38  ;;  %369 = vadd.xlane.f32.xlu1 %v368_v40 }
  0x36   : > { %922 = vmatpush.xpose.msk.msra.mxu0 %vm249_vm0, %v241_v33  ;;  %372 = vadd.xlane.f32.xlu2 %v371_v39 }
  0x3a   : > { %923 = vmatpush.xpose.msk.msra.mxu0 %vm249_vm0, %v240_v31 }
  0x3d   : > { %375 = vadd.xlane.f32.xlu0 %v374_v44  ;;  %378 = vadd.xlane.f32.xlu1 %v377_v45 }
  0x3e   : > { %924 = vmatpush.xpose.msk.msra.mxu0 %vm249_vm0, %v239_v25  ;;  %381 = vadd.xlane.f32.xlu2 %v380_v46 }
  0x42   : > { %925 = vmatpush.xpose.msk.msra.mxu0 %vm249_vm0, %v238_v21 }
  0x45   : > { %384 = vadd.xlane.f32.xlu0 %v383_v48  ;;  %387 = vadd.xlane.f32.xlu1 %v386_v50 }
  0x46   : > { %926 = vmatpush.xpose.msk.msra.mxu0 %vm249_vm0, %v237_v12 }
  0x4a   : > { %927 = vmatpush.xpose.msk.msra.mxu0 %vm249_vm0, %v1287_v8  ;;  %v436_v8 = vsel %vm433_vm1, 0.0, %v1172_v6  }
  0x4e   : > { %928 = vmatpush.xpose.msk.msra.mxu0 %vm249_vm0, %v1284_v7  ;;  %v1353_v7 = vsel %vm433_vm1, -2.0794415, %v1172_v6 }
  0x52   : > { %929 = vmatpush.xpose.msk.msra.mxu0 %vm249_vm0, %v1272_v3 }
  0x56   : > { %930 = vmatpush.xpose.msk.msra.mxu0 %vm249_vm0, %v1265_v1 }
  0x59   : > { %931 = vmatmul.msk.f32.vlgmr.msra.gmra.mxu0 %vm249_vm0, %v1292_v11 }
  0x90   : > { %v343_v51 = vpop.xlane.xlu0 %342  ;;  %v346_v52 = vpop.xlane.xlu1 %345 }
  0x91   : > { %391 = vxpose.xlu2.b32.start [1/16] (narrow) %v343_v51, 8  ;;  %v352_v54 = vpop.xlane.xlu2 %351 }
  0x98   : > { %v349_v53 = vpop.xlane.xlu1 %348  ;;  %v324_v55 = vpop.xlane.xlu0 %323 }
  0x99   : > { %392 = vxpose.xlu2.b32.cont [2/16] (narrow) %v346_v52, 8  ;;  %v355_v56 = vpop.xlane.xlu2 %354 }
  0xa0   : > { %v358_v57 = vpop.xlane.xlu0 %357  ;;  %v361_v58 = vpop.xlane.xlu1 %360 }
  0xa1   : > { %393 = vxpose.xlu2.b32.cont [3/16] (narrow) %v349_v53, 8  ;;  %v364_v59 = vpop.xlane.xlu2 %363 }
  0xa8   : > { %v367_v60 = vpop.xlane.xlu0 %366  ;;  %v370_v61 = vpop.xlane.xlu1 %369 }
  0xa9   : > { %394 = vxpose.xlu2.b32.cont [4/16] (narrow) %v352_v54, 8  ;;  %v373_v62 = vpop.xlane.xlu2 %372 }
  0xb0   : > { %v376_v63 = vpop.xlane.xlu0 %375  ;;  %v379_v0 = vpop.xlane.xlu1 %378 }
  0xb1   : > { %395 = vxpose.xlu2.b32.cont [5/16] (narrow) %v355_v56, 8  ;;  %v382_v1 = vpop.xlane.xlu2 %381 }
  0xb8   : > { %v385_v2 = vpop.xlane.xlu0 %384  ;;  %v388_v3 = vpop.xlane.xlu1 %387 }
  0xb9   : > { %396 = vxpose.xlu2.b32.cont [6/16] (narrow) %v358_v57, 8 }
  0xc1   : > { %397 = vxpose.xlu2.b32.cont [7/16] (narrow) %v361_v58, 8 }
  0xc9   : > { %398 = vxpose.xlu2.b32.cont [8/16] (narrow) %v364_v59, 8 }
  0xd1   : > { %399 = vxpose.xlu2.b32.cont [9/16] (narrow) %v367_v60, 8 }
  0xd6   : > { %v318_v9 = vpop.f32.mrf.mxu0 }
  0xd7   : > { %v389_v10 = vmul.f32 2.0, %v318_v9 }
  0xd9   : > { %400 = vxpose.xlu2.b32.cont [10/16] (narrow) %v370_v61, 8  ;;  %v390_v12 = vsub.f32 %v324_v55, %v389_v10 }
  0xe1   : > { %401 = vxpose.xlu2.b32.cont [11/16] (narrow) %v373_v62, 8 }
  0xe9   : > { %402 = vxpose.xlu2.b32.cont [12/16] (narrow) %v376_v63, 8 }
  0xf1   : > { %403 = vxpose.xlu2.b32.cont [13/16] (narrow) %v379_v0, 8 }
  0xf9   : > { %404 = vxpose.xlu2.b32.cont [14/16] (narrow) %v382_v1, 8 }
 0x101   : > { %405 = vxpose.xlu2.b32.cont [15/16] (narrow) %v385_v2, 8 }
 0x109   : > { %406 = vxpose.xlu2.b32.end [16/16] (narrow) %v388_v3, 8 }
 0x12a   : > { %v407_v11 = vpop.trf.xlu2 }
 0x12b   : > { %v423_v13 = vperm.slane %v407_v11, 0 }
 0x12d   : > { %v424_v14 = vadd.f32 %v423_v13, %v390_v12 }
 0x12f   : > { %v425_v15 = vmax.f32 %v424_v14, 0.0 }
 0x131   : > { %426 = vst [vmem:[%s1357_s20] sm:$0xff] %v425_v15  ;;  %v1360_v16 = vmul.f32 10.0, %v425_v15 }
 0x132 LB: >> { %s711_s28 = sadd.s32 5, %s1170_s23   ;;  %p448_p11 = scmp.lt.s32.totalorder %s1170_s23, 100  ;;  %vm484_vm5 = vcmask 7168   ;;  %s1170_s23 = sphi %s1370_s23, %s1564_s23   ;;  %v1166_v17 = vphi %v1368_v17, %v1563_v17   ;;  %v1162_v8 = vphi %v436_v8, %v1562_v8  }
 0x133   : >> { %v449_v18 = vsub.f32 %v1162_v8, %v1360_v16  ;;  %s500_s30 = sadd.s32 1, %s1170_s23  ;;  %s552_s7 = sadd.s32 2, %s1170_s23 }
 0x134   : >> { %s494_s29 = scalar_select %p448_p11, 1, 0 }
 0x135   : >> { %450 = vmax.xlane.f32.xlu0 %v449_v18  ;;  %p501_p12 = scmp.lt.s32.totalorder %s500_s30, 100  ;;  %p553_p13 = scmp.lt.s32.totalorder %s552_s7, 100 }
 0x136   : >> { %v495_v26 = vstv %s494_s29  ;;  %s604_s9 = sadd.s32 3, %s1170_s23  ;;  %s656_s11 = sadd.s32 4, %s1170_s23 }
 0x137   : >> { %vm1382_vm2 = vcmp.eq.s32.totalorder %v495_v26, 1  ;;  %s546_s6 = scalar_select %p501_p12, 1, 0 }
 0x138   : >> { %s598_s8 = scalar_select %p553_p13, 1, 0 }
 0x139   : >> { %v1401_v60 = vstv %s546_s6  ;;  %p605_p0 = scmp.lt.s32.totalorder %s604_s9, 100  ;;  %p657_p1 = scmp.lt.s32.totalorder %s656_s11, 100 }
 0x13a   : >> { %vm548_vm3 = vcmp.eq.s32.totalorder %v1401_v60, 1  ;;  %p442_p2 = scmp.lt.s32.totalorder %s711_s28, 100  ;;  %s1564_s23 = smov %s711_s28 }
 0x13b   : >> { %s650_s10 = scalar_select %p605_p0, 1, 0 }
 0x13c   : >> { %s702_s12 = scalar_select %p657_p1, 1, 0 }
 0x1a8   : >> { %v451_v19 = vpop.xlane.xlu0 %450 }
 0x1a9   : >> { %v452_v20 = vsub.f32 %v449_v18, %v451_v19 }
 0x1ab   : >> { %v453_v21 = vmul.f32 1.442695, %v452_v20 }
 0x1ad   : >> { %1010 = vpow2.f32 %v453_v21 }
 0x1b3   : >> { %v1011_v22 = vpop.eup %1010 }
 0x1b4   : >> { %455 = vadd.xlane.f32.xlu0 %v1011_v22 }
 0x227   : >> { %v456_v23 = vpop.xlane.xlu0 %455 }
 0x228   : >> { %1012 = vlog2.f32 %v456_v23 }
 0x22e   : >> { %v1013_v24 = vpop.eup %1012 }
 0x22f   : >> { %v458_v25 = vmul.f32 0.6931472, %v1013_v24 }
 0x231   : >> { %v459_v27 = vadd.f32 %v458_v25, %v451_v19 }
 0x233   : >> { %v1386_v29 = vsub.f32 -2.0794415, %v459_v27 }
 0x235   : >> { %v461_v30 = vsub.f32 %v1386_v29, %v1360_v16  ;;  %v1394_v31 = vsel %vm1382_vm2, %v1386_v29, %v1166_v17 }
 0x237   : >> { %v462_v32 = vrot.slane %v461_v30, 4 }
 0x239   : >> { %v463_v33 = vmax.f32 %v461_v30, %v462_v32 }
 0x23b   : >> { %v464_v34 = vrot.slane %v463_v33, 2 }
 0x23d   : >> { %v465_v35 = vmax.f32 %v463_v33, %v464_v34 }
 0x23f   : >> { %v466_v36 = vrot.slane %v465_v35, 1 }
 0x241   : >> { %v467_v37 = vmax.f32 %v465_v35, %v466_v36  ;;  %v1421_v36 = vstv %s598_s8 }
 0x242   : >> { %vm600_vm4 = vcmp.eq.s32.totalorder %v1421_v36, 1 }
 0x243   : >> { %v468_v38 = vsub.f32 %v461_v30, %v467_v37 }
 0x245   : >> { %v469_v39 = vmul.f32 1.442695, %v468_v38 }
 0x247   : >> { %1014 = vpow2.f32 %v469_v39 }
 0x24d   : >> { %v1015_v40 = vpop.eup %1014 }
 0x24e   : >> { %v471_v41 = vrot.slane %v1015_v40, 4 }
 0x250   : >> { %v472_v42 = vadd.f32 %v1015_v40, %v471_v41 }
 0x252   : >> { %v473_v43 = vrot.slane %v472_v42, 2 }
 0x254   : >> { %v474_v44 = vadd.f32 %v473_v43, %v472_v42 }
 0x256   : >> { %v475_v45 = vrot.slane %v474_v44, 1 }
 0x258   : >> { %v476_v46 = vadd.f32 %v475_v45, %v474_v44 }
 0x25a   : >> { %1016 = vlog2.f32 %v476_v46 }
 0x260   : >> { %v1017_v47 = vpop.eup %1016 }
 0x261   : >> { %v478_v48 = vmul.f32 0.6931472, %v1017_v47 }
 0x263   : >> { %v479_v49 = vadd.f32 %v478_v48, %v467_v37 }
 0x265   : >> { %v480_v50 = vsub.f32 %v1353_v7, %v479_v49 }
 0x267   : >> { %v498_v51 = vsel %vm1382_vm2, %v480_v50, %v1162_v8 }
 0x268   : >> { %v502_v52 = vsub.f32 %v498_v51, %v1360_v16 }
 0x26a   : >> { %503 = vmax.xlane.f32.xlu1 %v502_v52 }
 0x2dd   : >> { %v504_v53 = vpop.xlane.xlu1 %503 }
 0x2de   : >> { %v505_v54 = vsub.f32 %v502_v52, %v504_v53 }
 0x2e0   : >> { %v506_v55 = vmul.f32 1.442695, %v505_v54 }
 0x2e2   : >> { %1018 = vpow2.f32 %v506_v55 }
 0x2e8   : >> { %v1019_v56 = vpop.eup %1018 }
 0x2e9   : >> { %508 = vadd.xlane.f32.xlu1 %v1019_v56 }
 0x35c   : >> { %v509_v57 = vpop.xlane.xlu1 %508 }
 0x35d   : >> { %1020 = vlog2.f32 %v509_v57 }
 0x363   : >> { %v1021_v58 = vpop.eup %1020 }
 0x364   : >> { %v511_v59 = vmul.f32 0.6931472, %v1021_v58 }
 0x366   : >> { %v512_v61 = vadd.f32 %v511_v59, %v504_v53 }
 0x368   : >> { %v1404_v62 = vsub.f32 -2.0794415, %v512_v61 }
 0x36a   : >> { %v514_v63 = vsub.f32 %v1404_v62, %v1360_v16  ;;  %v1412_v0 = vsel %vm548_vm3, %v1404_v62, %v1394_v31  ;;  %v534_v1 = vsub.f32 %v1404_v62, %v1394_v31 }
 0x36c   : >> { %v515_v2 = vrot.slane %v514_v63, 4 }
 0x36e   : >> { %v516_v3 = vmax.f32 %v514_v63, %v515_v2 }
 0x370   : >> { %v517_v4 = vrot.slane %v516_v3, 2 }
 0x372   : >> { %v518_v5 = vmax.f32 %v516_v3, %v517_v4 }
 0x374   : >> { %v519_v6 = vrot.slane %v518_v5, 1 }
 0x376   : >> { %v520_v8 = vmax.f32 %v518_v5, %v519_v6 }
 0x378   : >> { %v521_v9 = vsub.f32 %v514_v63, %v520_v8 }
 0x37a   : >> { %v522_v10 = vmul.f32 1.442695, %v521_v9 }
 0x37c   : >> { %1022 = vpow2.f32 %v522_v10 }
 0x382   : >> { %v1023_v11 = vpop.eup %1022 }
 0x383   : >> { %v524_v12 = vrot.slane %v1023_v11, 4 }
 0x385   : >> { %v525_v13 = vadd.f32 %v1023_v11, %v524_v12 }
 0x387   : >> { %v526_v14 = vrot.slane %v525_v13, 2 }
 0x389   : >> { %v527_v15 = vadd.f32 %v526_v14, %v525_v13  ;;  %v1442_v14 = vstv %s650_s10 }
 0x38a   : >> { %vm652_vm6 = vcmp.eq.s32.totalorder %v1442_v14, 1 }
 0x38b   : >> { %v528_v18 = vrot.slane %v527_v15, 1 }
 0x38d   : >> { %v529_v19 = vadd.f32 %v528_v18, %v527_v15 }
 0x38f   : >> { %1024 = vlog2.f32 %v529_v19 }
 0x395   : >> { %v1025_v20 = vpop.eup %1024 }
 0x396   : >> { %v531_v21 = vmul.f32 0.6931472, %v1025_v20 }
 0x398   : >> { %v532_v22 = vadd.f32 %v531_v21, %v520_v8  ;;  %v481_v8 = vsub.f32 %v1386_v29, %v1166_v17 }
 0x39a   : >> { %v533_v23 = vsub.f32 %v1353_v7, %v532_v22  ;;  %v482_v9 = vand.u32 2147483647, %v481_v8 }
 0x39c   : >> { %v550_v24 = vsel %vm548_vm3, %v533_v23, %v498_v51  ;;  %v485_v10 = vsel %vm484_vm5, %v482_v9, 0.0 }
 0x39d   : >> { %v554_v25 = vsub.f32 %v550_v24, %v1360_v16 }
 0x39f   : >> { %555 = vmax.xlane.f32.xlu2 %v554_v25 }
 0x412   : >> { %v556_v26 = vpop.xlane.xlu2 %555 }
 0x413   : >> { %v557_v27 = vsub.f32 %v554_v25, %v556_v26 }
 0x415   : >> { %v558_v30 = vmul.f32 1.442695, %v557_v27 }
 0x417   : >> { %1026 = vpow2.f32 %v558_v30 }
 0x41d   : >> { %v1027_v32 = vpop.eup %1026 }
 0x41e   : >> { %560 = vadd.xlane.f32.xlu2 %v1027_v32 }
 0x491   : >> { %v561_v33 = vpop.xlane.xlu2 %560 }
 0x492   : >> { %1028 = vlog2.f32 %v561_v33 }
 0x498   : >> { %v1029_v34 = vpop.eup %1028 }
 0x499   : >> { %v563_v35 = vmul.f32 0.6931472, %v1029_v34 }
 0x49b   : >> { %v564_v37 = vadd.f32 %v563_v35, %v556_v26 }
 0x49d   : >> { %v1424_v38 = vsub.f32 -2.0794415, %v564_v37 }
 0x49f   : >> { %v566_v39 = vsub.f32 %v1424_v38, %v1360_v16  ;;  %v601_v40 = vsel %vm600_vm4, %v1424_v38, %v1412_v0  ;;  %v586_v41 = vsub.f32 %v1424_v38, %v1412_v0 }
 0x4a1   : >> { %v567_v42 = vrot.slane %v566_v39, 4 }
 0x4a3   : >> { %v568_v43 = vmax.f32 %v566_v39, %v567_v42 }
 0x4a5   : >> { %v569_v44 = vrot.slane %v568_v43, 2 }
 0x4a7   : >> { %v570_v45 = vmax.f32 %v568_v43, %v569_v44 }
 0x4a9   : >> { %v571_v46 = vrot.slane %v570_v45, 1 }
 0x4ab   : >> { %v572_v47 = vmax.f32 %v570_v45, %v571_v46 }
 0x4ad   : >> { %v573_v48 = vsub.f32 %v566_v39, %v572_v47 }
 0x4af   : >> { %v574_v49 = vmul.f32 1.442695, %v573_v48 }
 0x4b1   : >> { %1030 = vpow2.f32 %v574_v49  ;;  %v535_v49 = vand.u32 2147483647, %v534_v1  ;;  %v1462_v1 = vstv %s702_s12 }
 0x4b2   : >> { %vm704_vm7 = vcmp.eq.s32.totalorder %v1462_v1, 1 }
 0x4b7   : >> { %v1031_v50 = vpop.eup %1030 }
 0x4b8   : >> { %v576_v51 = vrot.slane %v1031_v50, 4 }
 0x4ba   : >> { %v577_v52 = vadd.f32 %v1031_v50, %v576_v51  ;;  %v537_v50 = vsel %vm484_vm5, %v535_v49, 0.0 }
 0x4bc   : >> { %v578_v53 = vrot.slane %v577_v52, 2 }
 0x4be   : >> { %v579_v54 = vadd.f32 %v578_v53, %v577_v52 }
 0x4c0   : >> { %v580_v55 = vrot.slane %v579_v54, 1 }
 0x4c2   : >> { %v581_v56 = vadd.f32 %v580_v55, %v579_v54  ;;  %v587_v55 = vand.u32 2147483647, %v586_v41 }
 0x4c4   : >> { %1032 = vlog2.f32 %v581_v56  ;;  %v589_v56 = vsel %vm484_vm5, %v587_v55, 0.0 }
 0x4ca   : >> { %v1033_v57 = vpop.eup %1032 }
 0x4cb   : >> { %v583_v58 = vmul.f32 0.6931472, %v1033_v57 }
 0x4cd   : >> { %v584_v59 = vadd.f32 %v583_v58, %v572_v47 }
 0x4cf   : >> { %v585_v61 = vsub.f32 %v1353_v7, %v584_v59 }
 0x4d1   : >> { %v602_v63 = vsel %vm600_vm4, %v585_v61, %v550_v24 }
 0x4d2   : >> { %v606_v2 = vsub.f32 %v602_v63, %v1360_v16 }
 0x4d4   : >> { %607 = vmax.xlane.f32.xlu0 %v606_v2 }
 0x547   : >> { %v608_v3 = vpop.xlane.xlu0 %607 }
 0x548   : >> { %v609_v4 = vsub.f32 %v606_v2, %v608_v3 }
 0x54a   : >> { %v610_v5 = vmul.f32 1.442695, %v609_v4 }
 0x54c   : >> { %1034 = vpow2.f32 %v610_v5 }
 0x552   : >> { %v1035_v6 = vpop.eup %1034 }
 0x553   : >> { %612 = vadd.xlane.f32.xlu1 %v1035_v6 }
 0x55b   : >> { %486 = vadd.xlane.f32.xlu1 %v485_v10 }
 0x5c6   : >> { %v613_v11 = vpop.xlane.xlu1 %612 }
 0x5c7   : >> { %1036 = vlog2.f32 %v613_v11 }
 0x5cd   : >> { %v1037_v12 = vpop.eup %1036 }
 0x5ce   : >> { %v615_v13 = vmul.f32 0.6931472, %v1037_v12 }
 0x5d0   : >> { %v616_v15 = vadd.f32 %v615_v13, %v608_v3 }
 0x5d2   : >> { %v617_v18 = vsub.f32 -2.0794415, %v616_v15 }
 0x5d4   : >> { %v618_v17 = vsub.f32 %v617_v18, %v1360_v16  ;;  %v638_v29 = vsub.f32 %v617_v18, %v601_v40  ;;  %v653_v19 = vsel %vm652_vm6, %v617_v18, %v601_v40 }
 0x5d6   : >> { %v619_v20 = vrot.slane %v618_v17, 4  ;;  %v639_v21 = vand.u32 2147483647, %v638_v29 }
 0x5d8   : >> { %v641_v22 = vsel %vm484_vm5, %v639_v21, 0.0  ;;  %v620_v23 = vmax.f32 %v618_v17, %v619_v20 }
 0x5d9   : >> { %642 = vadd.xlane.f32.xlu1 %v641_v22 }
 0x5da   : >> { %v621_v24 = vrot.slane %v620_v23, 2 }
 0x5dc   : >> { %v622_v25 = vmax.f32 %v620_v23, %v621_v24  ;;  %v487_v24 = vpop.xlane.xlu1 %486 }
 0x5de   : >> { %v623_v26 = vrot.slane %v622_v25, 1 }
 0x5e0   : >> { %v624_v27 = vmax.f32 %v622_v25, %v623_v26 }
 0x5e2   : >> { %v625_v30 = vsub.f32 %v618_v17, %v624_v27 }
 0x5e4   : >> { %v626_v32 = vmul.f32 1.442695, %v625_v30 }
 0x5e6   : >> { %1038 = vpow2.f32 %v626_v32 }
 0x5ec   : >> { %v1039_v33 = vpop.eup %1038 }
 0x5ed   : >> { %v628_v34 = vrot.slane %v1039_v33, 4 }
 0x5ef   : >> { %v629_v35 = vadd.f32 %v1039_v33, %v628_v34 }
 0x5f1   : >> { %v630_v37 = vrot.slane %v629_v35, 2 }
 0x5f3   : >> { %v631_v39 = vadd.f32 %v630_v37, %v629_v35 }
 0x5f5   : >> { %v632_v42 = vrot.slane %v631_v39, 1 }
 0x5f7   : >> { %v633_v40 = vadd.f32 %v632_v42, %v631_v39 }
 0x5f9   : >> { %1040 = vlog2.f32 %v633_v40 }
 0x5ff   : >> { %v1041_v43 = vpop.eup %1040 }
 0x600   : >> { %v635_v44 = vmul.f32 0.6931472, %v1041_v43 }
 0x602   : >> { %v636_v45 = vadd.f32 %v635_v44, %v624_v27  ;;  %v488_v27 = vrot.slane %v487_v24, 4 }
 0x604   : >> { %v637_v46 = vsub.f32 %v1353_v7, %v636_v45  ;;  %v489_v33 = vadd.f32 %v488_v27, %v487_v24 }
 0x606   : >> { %v654_v47 = vsel %vm652_vm6, %v637_v46, %v602_v63  ;;  %v490_v42 = vrot.slane %v489_v33, 2 }
 0x607   : >> { %v658_v48 = vsub.f32 %v654_v47, %v1360_v16 }
 0x608   : >> { %v491_v45 = vadd.f32 %v490_v42, %v489_v33 }
 0x609   : >> { %659 = vmax.xlane.f32.xlu2 %v658_v48 }
 0x611   : >> { %538 = vadd.xlane.f32.xlu2 %v537_v50 }
 0x64c   : >> { %v643_v34 = vpop.xlane.xlu1 %642 }
 0x64d   : >> { %v644_v39 = vrot.slane %v643_v34, 4 }
 0x64f   : >> { %v645_v44 = vadd.f32 %v644_v39, %v643_v34 }
 0x651   : >> { %v646_v49 = vrot.slane %v645_v44, 2 }
 0x67c   : >> { %v660_v51 = vpop.xlane.xlu2 %659 }
 0x67d   : >> { %v661_v52 = vsub.f32 %v658_v48, %v660_v51 }
 0x67f   : >> { %v662_v53 = vmul.f32 1.442695, %v661_v52 }
 0x681   : >> { %1042 = vpow2.f32 %v662_v53 }
 0x684   : >> { %v539_v25 = vpop.xlane.xlu2 %538 }
 0x685   : >> { %v540_v30 = vrot.slane %v539_v25, 4 }
 0x687   : >> { %v1043_v54 = vpop.eup %1042  ;;  %v541_v35 = vadd.f32 %v540_v30, %v539_v25 }
 0x688   : >> { %664 = vadd.xlane.f32.xlu0 %v1043_v54  ;;  %v647_v54 = vadd.f32 %v646_v49, %v645_v44 }
 0x689   : >> { %v542_v40 = vrot.slane %v541_v35, 2 }
 0x68b   : >> { %v543_v46 = vadd.f32 %v542_v40, %v541_v35 }
 0x68d   : >> { %v544_v50 = vrot.slane %v543_v46, 1 }
 0x690   : >> { %590 = vadd.xlane.f32.xlu0 %v589_v56 }
 0x6fb   : >> { %v665_v57 = vpop.xlane.xlu0 %664 }
 0x6fc   : >> { %1044 = vlog2.f32 %v665_v57  ;;  %v545_v57 = vadd.f32 %v544_v50, %v543_v46 }
 0x702   : >> { %v1045_v31 = vpop.eup %1044 }
 0x703   : >> { %v667_v62 = vmul.f32 0.6931472, %v1045_v31  ;;  %v591_v26 = vpop.xlane.xlu0 %590 }
 0x704   : >> { %v592_v32 = vrot.slane %v591_v26, 4 }
 0x705   : >> { %v668_v58 = vadd.f32 %v667_v62, %v660_v51 }
 0x706   : >> { %v593_v37 = vadd.f32 %v592_v32, %v591_v26 }
 0x707   : >> { %v669_v59 = vsub.f32 -2.0794415, %v668_v58  ;;  %v648_v58 = vrot.slane %v647_v54, 1 }
 0x708   : >> { %v594_v43 = vrot.slane %v593_v37, 2 }
 0x709   : >> { %v670_v61 = vsub.f32 %v669_v59, %v1360_v16  ;;  %v690_v0 = vsub.f32 %v669_v59, %v653_v19  ;;  %v1468_v17 = vsel %vm704_vm7, %v669_v59, %v653_v19  }
 0x70a   : >> { %v1561_v38 = vmov %v1468_v17  ;;  %v595_v48 = vadd.f32 %v594_v43, %v593_v37 }
 0x70b   : >> { %v671_v41 = vrot.slane %v670_v61, 4  ;;  %v691_v63 = vand.u32 2147483647, %v690_v0 }
 0x70c   : >> { %v596_v52 = vrot.slane %v595_v48, 1 }
 0x70d   : >> { %v672_v2 = vmax.f32 %v670_v61, %v671_v41  ;;  %v693_v3 = vsel %vm484_vm5, %v691_v63, 0.0 }
 0x70e   : >> { %694 = vadd.xlane.f32.xlu2 %v693_v3  ;;  %v597_v31 = vadd.f32 %v596_v52, %v595_v48 }
 0x70f   : >> { %v673_v4 = vrot.slane %v672_v2, 2 }
 0x711   : >> { %v674_v5 = vmax.f32 %v672_v2, %v673_v4  ;;  %v649_v2 = vadd.f32 %v648_v58, %v647_v54 }
 0x713   : >> { %v675_v6 = vrot.slane %v674_v5, 1 }
 0x715   : >> { %v676_v8 = vmax.f32 %v674_v5, %v675_v6 }
 0x717   : >> { %v677_v9 = vsub.f32 %v670_v61, %v676_v8 }
 0x719   : >> { %v678_v10 = vmul.f32 1.442695, %v677_v9 }
 0x71b   : >> { %1046 = vpow2.f32 %v678_v10 }
 0x721   : >> { %v1047_v11 = vpop.eup %1046 }
 0x722   : >> { %v680_v12 = vrot.slane %v1047_v11, 4 }
 0x724   : >> { %v681_v13 = vadd.f32 %v1047_v11, %v680_v12 }
 0x726   : >> { %v682_v15 = vrot.slane %v681_v13, 2 }
 0x728   : >> { %v683_v18 = vadd.f32 %v682_v15, %v681_v13 }
 0x72a   : >> { %v684_v29 = vrot.slane %v683_v18, 1 }
 0x72c   : >> { %v685_v17 = vadd.f32 %v684_v29, %v683_v18 }
 0x72e   : >> { %1048 = vlog2.f32 %v685_v17  ;;  %v1563_v17 = vmov %v1561_v38 }
 0x734   : >> { %v1049_v19 = vpop.eup %1048 }
 0x735   : >> { %v687_v20 = vmul.f32 0.6931472, %v1049_v19 }
 0x737   : >> { %v688_v21 = vadd.f32 %v687_v20, %v676_v8 }
 0x739   : >> { %v689_v22 = vsub.f32 %v1353_v7, %v688_v21 }
 0x73b   : >> { %v706_v23 = vsel %vm704_vm7, %v689_v22, %v654_v47   ;;  %v492_v47 = vrot.slane %v491_v45, 1 }
 0x73c   : >> { %v1562_v8 = vmov %v706_v23 }
 0x73d   : >> { %v493_v55 = vadd.f32 %v492_v47, %v491_v45 }
 0x73f   : >> { %v499_v59 = vsel %vm1382_vm2, %v493_v55, 0.0 }
 0x740   : >> { %v551_v0 = vsel %vm548_vm3, %v545_v57, %v499_v59 }
 0x741   : >> { %v603_v63 = vsel %vm600_vm4, %v597_v31, %v551_v0 }
 0x742   : >> { %v655_v4 = vsel %vm652_vm6, %v649_v2, %v603_v63 }
 0x781   : >> { %v695_v51 = vpop.xlane.xlu2 %694 }
 0x782   : >> { %v696_v53 = vrot.slane %v695_v51, 4 }
 0x784   : >> { %v697_v56 = vadd.f32 %v696_v53, %v695_v51 }
 0x786   : >> { %v698_v62 = vrot.slane %v697_v56, 2 }
 0x788   : >> { %v699_v61 = vadd.f32 %v698_v62, %v697_v56 }
 0x78a   : >> { %v700_v41 = vrot.slane %v699_v61, 1 }
 0x78c   : >> { %v701_v3 = vadd.f32 %v700_v41, %v699_v61 }
 0x78e   : >> { %v707_v5 = vsel %vm704_vm7, %v701_v3, %v655_v4 }
 0x78f   : >> { %939 = vpush %v707_v5 }
 0x7c0   : >> { %s940_s14 = spop %939 }
 0x7c1   : >> { %s710_s29 = smul.f32 0.1, %s940_s14 }
 0x7c3   : >> { %p443_p3 = scmp.ge.f32.partialorder %s710_s29, 0.1 }
 0x7c5   : >> { %p444_p4 = pnand %p443_p3, %p442_p2 }
 0x7c6   : > { %v712_v28 = vadd.f32 (%p444_p4), %v706_v23, %v1561_v38  ;;  %s934_s30 = sshll.u32 (%p444_p4), %s1219_s19, 3  ;;  %s752_s10 = sshll.u32 (%p444_p4), %s1364_s22, 4  ;;  %s753_s10 = int_to_ptr.vmem [resolvable:$true] %s752_s10 }
 0x7c7   : > { %447 = sbr.rel (!%p444_p4) target bundleno = 306 (0x132), region = 102  ;;  %s750_s28 = scalar_lea.hbm (%p444_p4), %s1555_s3, %s934_s30 }
 0x7c8   : > { %v713_v60 = vsub.f32 (%p444_p4), %v712_v28, %v1360_v16  ;;  %s764_s9 = scalar_lea.hbm (%p444_p4), %s1556_s4, %s934_s30  ;;  %s754_s11 = sshll.u32 (%p444_p4), %s750_s28, 4  ;;  %s755_s11 = int_to_ptr.hbm [resolvable:$true] %s754_s11 }
 0x7c9   : > { %s732_s12 = scalar_lea.sflag (%p444_p4), [#allocation3], %s1350_s13  ;;  %s1066_s14 = sshra.s32 (%p444_p4), %s755_s11, 4  ;;  %s1067_s14 = int_to_ptr.hbm [resolvable:$true] %s1066_s14 }
 0x7ca   : > { %v714_v36 = vmul.f32 (%p444_p4), 1.442695, %v713_v60  ;;  %s1068_s29 = scalar_lea.hbm (%p444_p4), %s1067_s14, 8  ;;  %s1072_s6 = scalar_lea.hbm (%p444_p4), %s1555_s3, 16 }
 0x7cb   : > { %p1069_p7 = scmp.ne.s32.totalorder (%p444_p4), %s1067_s14, %s1068_s29  ;;  %p1073_p10 = scmp.lt.s32.totalorder (%p444_p4), %s1067_s14, %s1555_s3 }
 0x7cc   : > { %1050 = vpow2.f32 %v714_v36  ;;  %p1074_p11 = scmp.lt.s32.totalorder %s1072_s6, %s1068_s29 }
 0x7cd   : > { %p1070_p8 = pnand %p1069_p7, %p1236_p5 }
 0x7ce   : > { %p1075_p12 = por %p1074_p11, %p1073_p10 }
 0x7cf   : > { %p1071_p9 = pneg %p1070_p8 }
 0x7d1   : > { %p1076_p13 = pnand %p1075_p12, %p1071_p9 }
 0x7d2   : > { %v1051_v14 = vpop.eup %1050 }
 0x7d3   : > { %v717_v1 = vmul.f32 %v1051_v14, %v1360_v16  ;;  %716 = vst [vmem:[%s1364_s22] sm:$0xff] %v1051_v14 }
 0x7d5   : > { %718 = vadd.xlane.f32.xlu0 %v717_v1 }
 0x7d6   : > { %1079 = shalt.err (!%p1076_p13)
}
 0x7d7   : > { %941 = dma.vmem_to_hbm [thread:$0]  (%p1236_p5), %s753_s10, 128, %s755_s11, %s732_s12  }
 0x7d8   : > { %s766_s22 = sshll.u32 %s1357_s20, 4  ;;  %s768_s30 = sshll.u32 %s764_s9, 4  ;;  %s767_s22 = int_to_ptr.vmem [resolvable:$true] %s766_s22  ;;  %s769_s30 = int_to_ptr.hbm [resolvable:$true] %s768_s30 }
 0x7d9   : > { %s737_s28 = scalar_lea.sflag [#allocation5], %s1350_s13  ;;  %s1094_s8 = sshra.s32 %s769_s30, 4  ;;  %s1095_s8 = int_to_ptr.hbm [resolvable:$true] %s1094_s8 }
 0x7da   : > { %s1096_s19 = scalar_lea.hbm %s1095_s8, 8  ;;  %s1100_s29 = scalar_lea.hbm %s1556_s4, 16 }
 0x7db   : > { %p1097_p0 = scmp.ne.s32.totalorder %s1095_s8, %s1096_s19  ;;  %p1101_p3 = scmp.lt.s32.totalorder %s1095_s8, %s1556_s4 }
 0x7dc   : > { %p1102_p4 = scmp.lt.s32.totalorder %s1100_s29, %s1096_s19 }
 0x7dd   : > { %p1098_p1 = pnand %p1097_p0, %p1236_p5 }
 0x7de   : > { %p1103_p7 = por %p1102_p4, %p1101_p3 }
 0x7df   : > { %p1099_p2 = pneg %p1098_p1 }
 0x7e1   : > { %p1104_p8 = pnand %p1103_p7, %p1099_p2 }
 0x7e3   : > { %1107 = shalt.err (!%p1104_p8)
}
 0x7e4   : > { %942 = dma.vmem_to_hbm [thread:$0]  (%p1236_p5), %s767_s22, 128, %s769_s30, %s737_s28  }
 0x7e5   : > { %s1565_s9 = scalar_lea.vmem %s1554_s2, %s1248_s27 }
 0x848   : > { %v719_v7 = vpop.xlane.xlu0 %718 }
 0x849   : > { %v720_v16 = vrot.slane %v719_v7, 4 }
 0x84b   : > { %v721_v38 = vadd.f32 %v720_v16, %v719_v7 }
 0x84d   : > { %v722_v6 = vrot.slane %v721_v38, 2 }
 0x84f   : > { %v723_v8 = vadd.f32 %v722_v6, %v721_v38 }
 0x851   : > { %v724_v9 = vrot.slane %v723_v8, 1 }
 0x853   : > { %v725_v10 = vadd.f32 %v724_v9, %v723_v8 }
 0x855   : > { %v726_v11 = vmul.f32 0.1, %v725_v10 }
 0x857   : > { %727 = vst [vmem:[%s1565_s9] sm:$0x1] %v726_v11 }
 0x858 PF: > { %p952_p9 = scmp.ge.s32.totalorder %s1158_s18, 2  ;;  %s786_s25 = sand.u32 1, %s1146_s15  }
 0x859   : > { %s787_s10 = scalar_lea.sflag [#allocation3], %s786_s25 }
 0x85a   : > { %p946_p5 = pnand %p952_p9, %p1240_p6 }
 0x85c   : > { %p947_p10 = pneg %p946_p5 }
 0x85e   : > { %1137 = dma.done.wait (%p947_p10), %s787_s10, 128  }
 0x85f   : > { %1139 = vsyncadd (%p947_p10), %s787_s10, 4294967168  ;;  %s797_s11 = scalar_lea.sflag [#allocation5], %s786_s25 }
 0x860   : > { %1141 = dma.done.wait (%p947_p10), %s797_s11, 128  }
 0x861   : > { %1143 = vsyncadd (%p947_p10), %s797_s11, 4294967168  ;;  %p18_p11 = scmp.ge.s32.totalorder %s1223_s21, 4   ;;  %s1566_s15 = smov %s1150_s16 }
 0x862   : > { %s1567_s16 = smov %s1154_s17  ;;  %s1568_s17 = smov %s1234_s24 }
 0x863   : > { %s1569_s18 = smov %s1223_s21  ;;  %20 = sbr.rel (!%p18_p11) target bundleno = 5 (0x5), region = 113 }
 0x868   :  { %803 = vsyncpa [#allocation3], 1 }
 0x869   :  { %805 = vsyncpa [#allocation3 + $0x1], 1 }
 0x86a   :  { %806 = vsyncpa [#allocation5], 1 }
 0x86b   :  { %808 = vsyncpa [#allocation5 + $0x1], 1 }

</bundles_post_ra>
